<compile_context>
chip_gen: v5e
topology: v5e:2x2
jax: 0.10.0
libtpu: 0.0.40
codegen_flags: <defaults>
</compile_context>

<pallas_src>
import functools

import jax
import jax.numpy as jnp
from jax.experimental import pallas as pl
from jax.experimental.pallas import tpu as pltpu


def _round_up(a, b):
    return (a + b - 1) // b * b


def _vmem_capacity_bytes():
    """Per-TensorCore VMEM capacity; conservative fallback = v7x's 64 MiB."""
    try:
        cap = int(pltpu.get_tpu_info().vmem_capacity_bytes)
        if cap > 0:
            return cap
    except Exception:
        pass
    return 64 * 1024 * 1024


def _num_tensorcores():
    """TensorCores per JAX device: 2 on megacore chips (v4/v5p/v7x), else 1."""
    try:
        kind = jax.devices()[0].device_kind.lower()
    except Exception:
        return 1
    if "lite" in kind or "v5e" in kind or "v6" in kind:
        return 1                                   # v5e / v6e: 1 TC per chip
    if any(k in kind for k in ("v4", "v5p", "v5", "7x", "v7")):
        return 2                                   # megacore: 2 TCs per device
    return 1


def _focal_loss_kernel(x_ref, t_ref, out_ref, *, gamma, n_rows, tile_n,
                       tiles_per_core):
    c = pl.program_id(0)          # 'parallel' per-core axis
    i = pl.program_id(1)          # 'arbitrary' sequential reduction axis

    # Output block index is constant over `i`, so the block stays resident in
    # VMEM across the reduction: use it directly as the running-sum
    # accumulator (pure vector ops, no SMEM/scalar-unit dependency per step).
    @pl.when(i == 0)
    def _():
        out_ref[...] = jnp.zeros_like(out_ref)

    x = x_ref[...].astype(jnp.float32)       # (tile_n, C) logits (bf16 ok)
    t = t_ref[...]                           # (tile_n, 1) int32 target indices

    # CrossEntropyLoss(reduction='none'): ce_i = logsumexp(x_i) - x_i[t_i].
    # Reuse the row-wise exp for pt = softmax(x)[t] = e_t / sum_e, so no
    # second (column) exp is pushed to the EUP.
    m = jnp.max(x, axis=-1, keepdims=True)
    e = jnp.exp(x - m)                                        # (tile_n, C)
    sum_e = jnp.sum(e, axis=-1, keepdims=True)                # (tile_n, 1)
    hit = jax.lax.broadcasted_iota(jnp.int32, x.shape, 1) == t
    x_t = jnp.sum(jnp.where(hit, x, 0.0), axis=-1, keepdims=True)
    e_t = jnp.sum(jnp.where(hit, e, 0.0), axis=-1, keepdims=True)

    ce = (m - x_t) + jnp.log(sum_e)          # finite even when pt underflows
    pt = e_t / sum_e                         # == exp(-ce), no extra EUP exp
    one_minus_pt = jnp.maximum(1.0 - pt, 0.0)  # guard fp rounding at pt ~ 1
    if gamma == 2:                           # integer-power fast path (VPU mul)
        w = jnp.square(one_minus_pt)
    elif float(gamma) == int(gamma) and gamma >= 0:
        w = one_minus_pt ** int(gamma)
    else:
        w = one_minus_pt ** gamma
    focal = w * ce                           # (tile_n, 1)

    # Mask rows past the end of the batch (ragged last tile and clamped
    # duplicate tiles).  Keep this a SELECT so garbage edge rows (possible
    # NaN/Inf) cannot propagate.
    g = c * tiles_per_core + i               # logical global tile index
    row = jax.lax.broadcasted_iota(jnp.int32, focal.shape, 0)
    valid = (g * tile_n + row) < n_rows
    focal = jnp.where(valid, focal, 0.0)

    # Running SUM (every element of the (8, 128) block carries the same value;
    # the wrapper reads one element per core and applies 1/N exactly once).
    out_ref[...] += jnp.sum(focal, axis=0, keepdims=True)


def focal_loss(logits, targets, gamma=2, reduction="mean", weight=None):
    """Pallas implementation of FocalLoss.forward for (N, C) logits, (N,) targets."""
    # TODO(synk): class `weight` and reduction='none' not wired up (module
    # defaults are weight=None, reduction='mean'; 'sum' also supported here).
    assert weight is None and reduction in ("mean", "sum")
    n, c = logits.shape
    t2 = targets.astype(jnp.int32).reshape(n, 1)

    # --- Tile sizing: as many rows as comfortably fit the per-core VMEM. ---
    vmem_cap = _vmem_capacity_bytes()
    c_pad = _round_up(c, 128)
    row_bytes = (2 * (c_pad * logits.dtype.itemsize + 128 * 4)  # dbl-buffered in
                 + 6 * c_pad * 4)                               # f32 temporaries
    budget = (vmem_cap * 7) // 10
    tile_n = max(8, (budget // row_bytes) // 8 * 8)
    tile_n = min(tile_n, 16384, _round_up(n, 8))   # 16384-row cap bounds compile

    n_tiles = pl.cdiv(n, tile_n)
    ncores = min(_num_tensorcores(), n_tiles)
    tiles_per_core = pl.cdiv(n_tiles, ncores)

    def in_map(ci, ti):
        # Clamp so every DMA stays in-bounds; logically-OOB duplicate tiles
        # are fully masked inside the kernel via the global row index.
        return (jnp.minimum(ci * tiles_per_core + ti, n_tiles - 1), 0)

    kernel = functools.partial(
        _focal_loss_kernel, gamma=gamma, n_rows=n,
        tile_n=tile_n, tiles_per_core=tiles_per_core)

    cost = pl.CostEstimate(
        flops=10 * n * c,
        transcendentals=n * c + 2 * n,
        bytes_accessed=n * c * logits.dtype.itemsize + n * 4
        + ncores * 8 * 128 * 4)

    vmem_limit = max(32 << 20, min((vmem_cap * 85) // 100, 100 << 20))

    partials = pl.pallas_call(
        kernel,
        out_shape=jax.ShapeDtypeStruct((ncores * 8, 128), jnp.float32),
        grid=(ncores, tiles_per_core),
        in_specs=[
            pl.BlockSpec((tile_n, c), in_map),   # logits tile
            pl.BlockSpec((tile_n, 1), in_map),   # targets tile (int32 column)
        ],
        out_specs=pl.BlockSpec((8, 128), lambda ci, ti: (ci, 0)),
        compiler_params=pltpu.CompilerParams(
            dimension_semantics=("parallel", "arbitrary"),
            vmem_limit_bytes=vmem_limit),
        cost_estimate=cost,
    )(logits, t2)

    # Tiny per-core partial add; 'mean' applies the single 1/N scale here.
    # (Single f32 running sum per core: fine for a loss scalar; for N >~ 1e7
    # consider pairwise partials.)
    total = jnp.sum(partials[::8, 0])
    if reduction == "sum":
        return total
    return total / jnp.float32(n)


def _focal_loss_ref(logits, targets, gamma=2):
    logp = jax.nn.log_softmax(logits.astype(jnp.float32), axis=-1)
    ce = -jnp.take_along_axis(logp, targets[:, None], axis=-1)[:, 0]
    pt = jnp.exp(-ce)
    return jnp.mean((1.0 - pt) ** gamma * ce)


if __name__ == "__main__":
    key = jax.random.PRNGKey(0)
    k1, k2, k3, k4 = jax.random.split(key, 4)

    # Small shapes consistent with CrossEntropyLoss((N, C), (N,)).
    N, C = 8, 32
    logits = jax.random.normal(k1, (N, C), dtype=jnp.float32)
    targets = jax.random.randint(k2, (N,), 0, C, dtype=jnp.int32)

    loss = focal_loss(logits, targets, gamma=2, reduction="mean")
    loss = jax.block_until_ready(loss)
    ref = _focal_loss_ref(logits, targets, gamma=2)
    assert jnp.allclose(loss, ref, rtol=1e-5, atol=1e-5), (loss, ref)

    # Exercise the ragged-masking / larger-tile path too.
    N2, C2 = 2500, 32
    logits2 = jax.random.normal(k3, (N2, C2), dtype=jnp.float32)
    targets2 = jax.random.randint(k4, (N2,), 0, C2, dtype=jnp.int32)
    loss2 = jax.block_until_ready(focal_loss(logits2, targets2))
    ref2 = _focal_loss_ref(logits2, targets2)
    assert jnp.allclose(loss2, ref2, rtol=1e-5, atol=1e-5), (loss2, ref2)

    print("KERNEL_OK")
</pallas_src>

<mosaic_0001>
module attributes {stable_mosaic.version = 11 : i64} {
  func.func @_focal_loss_kernel(%arg0: i32, %arg1: i32, %arg2: memref<8x32xf32, #tpu.memory_space<vmem>>, %arg3: memref<8x1xi32, #tpu.memory_space<vmem>>, %arg4: memref<8x128xf32, #tpu.memory_space<vmem>>) attributes {dimension_semantics = [#tpu.dimension_semantics<parallel>, #tpu.dimension_semantics<arbitrary>], iteration_bounds = array<i64: 1, 1>, scalar_prefetch = 0 : i64, scratch_operands = 0 : i64, tpu.core_type = #tpu.core_type<tc>, window_params = [{transform_indices = @transform_0, window_bounds = array<i64: 8, 32>}, {transform_indices = @transform_1, window_bounds = array<i64: 8, 1>}, {transform_indices = @transform_2, window_bounds = array<i64: 8, 128>}]} {
    %c0_i32 = arith.constant 0 : i32
    %0 = arith.cmpi eq, %arg1, %c0_i32 : i32
    %1 = arith.extui %0 : i1 to i32
    %c0_i32_0 = arith.constant 0 : i32
    %2 = arith.cmpi ne, %1, %c0_i32_0 : i32
    scf.if %2 {
      %cst_18 = arith.constant 0.000000e+00 : f32
      %49 = vector.broadcast %cst_18 : f32 to vector<8x128xf32>
      %c0_19 = arith.constant 0 : index
      %c0_20 = arith.constant 0 : index
      %50 = vector.load %arg4[%c0_19, %c0_20] : memref<8x128xf32, #tpu.memory_space<vmem>>, vector<8x128xf32>
      tpu.vector_store %arg4[%c0_19, %c0_20], %49 {strides = array<i32>} : memref<8x128xf32, #tpu.memory_space<vmem>>, vector<8x128xf32>,
    } else {
    }
    %c0 = arith.constant 0 : index
    %c0_1 = arith.constant 0 : index
    %3 = vector.load %arg2[%c0, %c0_1] : memref<8x32xf32, #tpu.memory_space<vmem>>, vector<8x32xf32>
    %c0_2 = arith.constant 0 : index
    %c0_3 = arith.constant 0 : index
    %4 = vector.load %arg3[%c0_2, %c0_3] : memref<8x1xi32, #tpu.memory_space<vmem>>, vector<8x1xi32>
    %cst = arith.constant dense<0xFF800000> : vector<8xf32>
    %5 = vector.multi_reduction <maximumf>, %3, %cst [1] : vector<8x32xf32> to vector<8xf32>
    %6 = vector.shape_cast %5 : vector<8xf32> to vector<8x1xf32>
    %7 = vector.broadcast %6 : vector<8x1xf32> to vector<8x32xf32>
    %8 = arith.subf %3, %7 : vector<8x32xf32>
    %9 = math.exp %8 : vector<8x32xf32>
    %cst_4 = arith.constant dense<0.000000e+00> : vector<8xf32>
    %10 = vector.multi_reduction <add>, %9, %cst_4 [1] : vector<8x32xf32> to vector<8xf32>
    %11 = vector.shape_cast %10 : vector<8xf32> to vector<8x1xf32>
    %12 = tpu.iota {dimensions = array<i32: 1>} : vector<8x32xi32>
    %13 = vector.broadcast %4 : vector<8x1xi32> to vector<8x32xi32>
    %14 = arith.cmpi eq, %12, %13 : vector<8x32xi32>
    %cst_5 = arith.constant 0.000000e+00 : f32
    %15 = vector.broadcast %cst_5 : f32 to vector<8x32xf32>
    %16 = arith.select %14, %3, %15 : vector<8x32xi1>, vector<8x32xf32>
    %cst_6 = arith.constant dense<0.000000e+00> : vector<8xf32>
    %17 = vector.multi_reduction <add>, %16, %cst_6 [1] : vector<8x32xf32> to vector<8xf32>
    %18 = vector.shape_cast %17 : vector<8xf32> to vector<8x1xf32>
    %cst_7 = arith.constant 0.000000e+00 : f32
    %19 = vector.broadcast %cst_7 : f32 to vector<8x32xf32>
    %20 = arith.select %14, %9, %19 : vector<8x32xi1>, vector<8x32xf32>
    %cst_8 = arith.constant dense<0.000000e+00> : vector<8xf32>
    %21 = vector.multi_reduction <add>, %20, %cst_8 [1] : vector<8x32xf32> to vector<8xf32>
    %22 = vector.shape_cast %21 : vector<8xf32> to vector<8x1xf32>
    %23 = arith.subf %6, %18 : vector<8x1xf32>
    %24 = math.log %11 : vector<8x1xf32>
    %25 = arith.addf %23, %24 : vector<8x1xf32>
    %26 = arith.divf %22, %11 : vector<8x1xf32>
    %cst_9 = arith.constant 1.000000e+00 : f32
    %27 = vector.broadcast %cst_9 : f32 to vector<8x1xf32>
    %28 = arith.subf %27, %26 : vector<8x1xf32>
    %cst_10 = arith.constant 0.000000e+00 : f32
    %29 = vector.broadcast %cst_10 : f32 to vector<8x1xf32>
    %30 = arith.maximumf %28, %29 : vector<8x1xf32>
    %31 = arith.mulf %30, %30 : vector<8x1xf32>
    %32 = arith.mulf %31, %25 : vector<8x1xf32>
    %c1_i32 = arith.constant 1 : i32
    %33 = arith.muli %arg0, %c1_i32 : i32
    %34 = arith.addi %33, %arg1 : i32
    %35 = tpu.iota {dimensions = array<i32: 0>} : vector<8x1xi32>
    %c8_i32 = arith.constant 8 : i32
    %36 = arith.muli %34, %c8_i32 : i32
    %37 = vector.broadcast %36 : i32 to vector<8x1xi32>
    %38 = arith.addi %37, %35 : vector<8x1xi32>
    %c8_i32_11 = arith.constant 8 : i32
    %39 = vector.broadcast %c8_i32_11 : i32 to vector<8x1xi32>
    %40 = arith.cmpi slt, %38, %39 : vector<8x1xi32>
    %cst_12 = arith.constant 0.000000e+00 : f32
    %41 = vector.broadcast %cst_12 : f32 to vector<8x1xf32>
    %42 = arith.select %40, %32, %41 : vector<8x1xi1>, vector<8x1xf32>
    %c0_13 = arith.constant 0 : index
    %c0_14 = arith.constant 0 : index
    %43 = vector.load %arg4[%c0_13, %c0_14] : memref<8x128xf32, #tpu.memory_space<vmem>>, vector<8x128xf32>
    %cst_15 = arith.constant dense<0.000000e+00> : vector<1xf32>
    %44 = vector.multi_reduction <add>, %42, %cst_15 [0] : vector<8x1xf32> to vector<1xf32>
    %45 = vector.shape_cast %44 : vector<1xf32> to vector<1x1xf32>
    %46 = vector.broadcast %45 : vector<1x1xf32> to vector<8x128xf32>
    %47 = arith.addf %43, %46 : vector<8x128xf32>
    %c0_16 = arith.constant 0 : index
    %c0_17 = arith.constant 0 : index
    %48 = vector.load %arg4[%c0_16, %c0_17] : memref<8x128xf32, #tpu.memory_space<vmem>>, vector<8x128xf32>
    tpu.vector_store %arg4[%c0_16, %c0_17], %47 {strides = array<i32>} : memref<8x128xf32, #tpu.memory_space<vmem>>, vector<8x128xf32>,
    return
  }
  func.func @transform_0(%arg0: i32, %arg1: i32) -> (i32, i32) {
    %c1_i32 = arith.constant 1 : i32
    %0 = arith.muli %arg0, %c1_i32 : i32
    %1 = arith.addi %0, %arg1 : i32
    %c0_i32 = arith.constant 0 : i32
    %2 = arith.minsi %1, %c0_i32 : i32
    %c0_i32_0 = arith.constant 0 : i32
    %c0_i32_1 = arith.constant 0 : i32
    return %2, %c0_i32_0 : i32, i32
  }
  func.func @transform_1(%arg0: i32, %arg1: i32) -> (i32, i32) {
    %c1_i32 = arith.constant 1 : i32
    %0 = arith.muli %arg0, %c1_i32 : i32
    %1 = arith.addi %0, %arg1 : i32
    %c0_i32 = arith.constant 0 : i32
    %2 = arith.minsi %1, %c0_i32 : i32
    %c0_i32_0 = arith.constant 0 : i32
    %c0_i32_1 = arith.constant 0 : i32
    return %2, %c0_i32_0 : i32, i32
  }
  func.func @transform_2(%arg0: i32, %arg1: i32) -> (i32, i32) {
    %c0_i32 = arith.constant 0 : i32
    %c0_i32_0 = arith.constant 0 : i32
    return %arg0, %c0_i32 : i32, i32
  }
}

</mosaic_0001>

<bundles_post_ra>
// kernel: tpu_custom_call.1
= control target key start
LH: loop header
LB: loop body
LE: loop exit
PB: predicated region body
PF: predicated region fallthrough
CT: control target
= control target key end

     0   :  { %vm73_vm0 = vcmask 261120   ;;  %s231_s0 = inlined_call_operand.vmem [shape: f32[8,32], index: 0, kind: input, shape index: {}]   ;;  %s232_s1 = inlined_call_operand.vmem [shape: s32[8,1], index: 1, kind: input, shape index: {}]   ;;  %s233_s2 = inlined_call_operand.hbm [shape: f32[8,128], index: 2, kind: output, shape index: {}]  }
   0x1   :  { %v71_v0 = vld [vmem:[%s231_s0] sm:$0xff] }
   0x2   :  { %7 = vsyncpa [#allocation3], 0  ;;  %v74_v1 = vsel %vm73_vm0, %v71_v0, -inf  ;;  %v201_v2 = vmov 0   ;;  %v72_v3 = vld [vmem:[%s232_s1] sm:$0xff]  ;;  %v83_v9 = vlaneseq  ;;  %s202_s0 = smov [#allocation2]  }
   0x3   :  { %168 = vset.pattern.permute.xlu0 %v201_v2  ;;  %s142_s1 = sshll.u32 %s202_s0, 4  ;;  %s144_s15 = sshll.u32 %s233_s2, 4  ;;  %s143_s1 = int_to_ptr.vmem [resolvable:$true] %s142_s1  ;;  %s145_s15 = int_to_ptr.hbm [resolvable:$true] %s144_s15 }
   0x4   :  { %75 = vmax.xlane.f32.xlu0 %v74_v1  ;;  %v84_v10 = vand.u32 127, %v83_v9 }
  0x18   :  { %86 = vperm.xlu0 %168, %v72_v3  }
  0x77   :  { %v76_v4 = vpop.xlane.xlu0 %75 }
  0x78   :  { %v77_v5 = vsub.f32 %v71_v0, %v76_v4 }
  0x7a   :  { %v78_v6 = vmul.f32 1.442695, %v77_v5 }
  0x7c   :  { %169 = vpow2.f32 %v78_v6 }
  0x82   :  { %v170_v7 = vpop.eup %169 }
  0x83   :  { %v80_v8 = vsel %vm73_vm0, %v170_v7, 0.0 }
  0x84   :  { %81 = vadd.xlane.f32.xlu1 %v80_v8 }
  0x8a   :  { %v87_v11 = vpop.permute.xlu0 %86 }
  0x8b   :  { %vm88_vm1 = vcmp.eq.s32.totalorder %v84_v10, %v87_v11 }
  0x8c   :  { %v93_v12 = vsel %vm88_vm1, %v170_v7, 0.0  ;;  %v89_v13 = vsel %vm88_vm1, %v71_v0, 0.0 }
  0x8d   :  { %v94_v14 = vsel %vm73_vm0, %v93_v12, 0.0  ;;  %v90_v15 = vsel %vm73_vm0, %v89_v13, 0.0 }
  0x8e   :  { %95 = vadd.xlane.f32.xlu1 %v94_v14  ;;  %91 = vadd.xlane.f32.xlu2 %v90_v15 }
  0xf7   :  { %v82_v16 = vpop.xlane.xlu1 %81 }
  0xf8   :  { %171 = vrcp.f32 %v82_v16  ;;  %v112_v20 = vand.u32 2147483648, %v82_v16  ;;  %v110_v22 = vand.u32 2147483647, %v82_v16  ;;  %vm106_vm3 = vweird.f32 %v82_v16 }
  0xf9   :  { %173 = vlog2.f32 %v82_v16 }
  0xfa   :  { %v113_v24 = vor.u32 1.1754944e-38, %v112_v20  ;;  %vm111_vm5 = vcmp.eq.f32.partialorder %v110_v22, 8.507059e+37 }
  0xfe   :  { %v172_v17 = vpop.eup %171 }
  0xff   :  { %v102_v18 = vmul.f32 %v172_v17, %v82_v16  ;;  %vm107_vm2 = vweird.f32 %v172_v17  ;;  %v174_v30 = vpop.eup %173 }
 0x100   :  { %vm108_vm4 = vmor %vm106_vm3, %vm107_vm2  ;;  %v99_v34 = vmul.f32 0.6931472, %v174_v30 }
 0x101   :  { %v103_v19 = vsub.f32 1.0, %v102_v18  ;;  %v96_v27 = vpop.xlane.xlu1 %95  ;;  %v92_v28 = vpop.xlane.xlu2 %91 }
 0x102   :  { %v97_v32 = vsub.f32 %v76_v4, %v92_v28 }
 0x103   :  { %v104_v21 = vmul.f32 %v172_v17, %v103_v19 }
 0x104   :  { %v100_v36 = vadd.f32 %v99_v34, %v97_v32 }
 0x105   :  { %v105_v23 = vadd.f32 %v172_v17, %v104_v21 }
 0x107   :  { %v109_v25 = vsel %vm108_vm4, %v172_v17, %v105_v23 }
 0x108   :  { %v114_v26 = vsel %vm111_vm5, %v113_v24, %v109_v25 }
 0x109   :  { %v115_v29 = vmul.f32 %v114_v26, %v96_v27 }
 0x10b   :  { %v116_v31 = vsub.f32 1.0, %v115_v29 }
 0x10d   :  { %v117_v33 = vmax.f32 %v116_v31, 0.0 }
 0x10f   :  { %v118_v35 = vmul.f32 %v117_v33, %v117_v33 }
 0x111   :  { %v119_v37 = vmul.f32 %v118_v35, %v100_v36 }
 0x113   :  { %v129_v38 = vrot.slane %v119_v37, 4 }
 0x115   :  { %v130_v39 = vadd.f32 %v129_v38, %v119_v37 }
 0x117   :  { %v131_v40 = vrot.slane %v130_v39, 2 }
 0x119   :  { %v132_v41 = vadd.f32 %v131_v40, %v130_v39 }
 0x11b   :  { %v133_v42 = vrot.slane %v132_v41, 1 }
 0x11d   :  { %v134_v43 = vadd.f32 %v133_v42, %v132_v41 }
 0x11f   :  { %136 = vst [vmem:[#allocation2] sm:$0xff] %v134_v43 }
 0x120   :  { %147 = dma.vmem_to_hbm [thread:$0]  %s143_s1, 128, %s145_s15, [#allocation3]  }
 0x121   :  { %199 = dma.done.wait [#allocation3], 128  }
 0x122   :  { %200 = vsyncadd [#allocation3], 4294967168 }
 0x123   :  { %152 = vsyncpa [#allocation3], 1 }

</bundles_post_ra>
